<compile_context>
chip_gen: v7x
topology: tpu7x:2x2x1
jax: 0.10.0
libtpu: 0.0.40
codegen_flags: <defaults>
</compile_context>

<pallas_src>
import functools

import jax
import jax.numpy as jnp
from jax.experimental import pallas as pl
from jax.experimental.pallas import tpu as pltpu


def _round_up(x: int, m: int) -> int:
    return (x + m - 1) // m * m


def _fused_mlp_kernel(*refs, n_layers: int):
    """refs = (x_ref, w0, b0, w1, b1, ..., w_{n-1}, b_{n-1}, o_ref).

    Computes o = (((x @ w0 + b0).relu()) @ w1 + b1).relu() ... @ w_{n-1} + b_{n-1}
    entirely in VMEM.  Matmuls in bf16 with f32 accumulation; bias/ReLU in f32.
    """
    x_ref = refs[0]
    o_ref = refs[-1]
    h = x_ref[...]  # bf16 activations (tm, K0_pad)
    for k in range(n_layers):
        w_ref = refs[1 + 2 * k]
        b_ref = refs[2 + 2 * k]
        y = jnp.dot(h, w_ref[...], preferred_element_type=jnp.float32)
        y = y + b_ref[...]  # (1, N) bias broadcasts over rows, f32
        if k != n_layers - 1:
            y = jnp.maximum(y, 0.0)
            # TODO(synk): training-mode dropout (pltpu.prng_seed / prng_random_bits)
            # would go here; eval-mode dropout is identity, intentionally omitted.
            h = y.astype(jnp.bfloat16)  # feed next MXU matmul in bf16
        else:
            h = y  # final logits stay f32
    o_ref[...] = h.astype(o_ref.dtype)


def init_mlp_params(key, seq_len, in_features, num_classes,
                    hidden_layers=(512, 512), dtype=jnp.float32):
    """Deterministic init mirroring nn.Linear shapes: W (out, in), b (out,)."""
    all_layers = [in_features * seq_len] + list(hidden_layers) + [num_classes]
    params = []
    for k in range(len(all_layers) - 1):
        fan_in, fan_out = all_layers[k], all_layers[k + 1]
        key, kw, kb = jax.random.split(key, 3)
        bound = 1.0 / jnp.sqrt(fan_in)
        w = jax.random.uniform(kw, (fan_out, fan_in), dtype,
                               minval=-bound, maxval=bound)
        b = jax.random.uniform(kb, (fan_out,), dtype,
                               minval=-bound, maxval=bound)
        params.append((w, b))
    return params


def pack_params(params, seq_len, in_features):
    """One-time prep: transpose to (in, out), cast weights to bf16, pad the first
    layer's input dim and the last layer's output dim to lane (128) multiples."""
    K0 = seq_len * in_features
    K0_pad = _round_up(K0, 128)
    n = len(params)
    packed = []
    for k, (w, b) in enumerate(params):
        wt = w.T  # (in, out) -> lane-dense weight layout for the MXU
        if k == 0 and K0_pad != K0:
            wt = jnp.pad(wt, ((0, K0_pad - K0), (0, 0)))
        if k == n - 1:
            n_out = wt.shape[1]
            n_pad = _round_up(n_out, 128)
            if n_pad != n_out:
                wt = jnp.pad(wt, ((0, 0), (0, n_pad - n_out)))
                b = jnp.pad(b, (0, n_pad - n_out))
        packed.append((wt.astype(jnp.bfloat16),
                       b.astype(jnp.float32).reshape(1, -1)))
    return packed


@functools.partial(jax.jit, static_argnames=("num_classes",))
def mlp_forward(x, packed, num_classes):
    """x: (batch, seq_len, in_features) -> logits (batch, num_classes)."""
    B = x.shape[0]
    h = x.reshape(B, -1).astype(jnp.bfloat16)  # nn.Flatten() + bf16 for MXU
    K0 = h.shape[1]
    K0_pad = packed[0][0].shape[0]
    if K0_pad != K0:
        h = jnp.pad(h, ((0, 0), (0, K0_pad - K0)))

    # Pad batch to a sublane multiple; tile it across the grid when large so the
    # batch axis shards across TensorCores (v7x megacore) — at B=2 this is grid=(1,).
    B_pad = _round_up(max(B, 8), 8)
    if B_pad != B:
        h = jnp.pad(h, ((0, B_pad - B), (0, 0)))
    tm = 128 if B_pad % 128 == 0 else B_pad

    n_layers = len(packed)
    N_out = packed[-1][0].shape[1]  # lane-padded (multiple of 128)

    in_specs = [pl.BlockSpec((tm, K0_pad), lambda i: (i, 0))]
    flat_args = [h]
    flops = 0
    bytes_accessed = h.size * h.dtype.itemsize + B_pad * N_out * 4
    for (w, b) in packed:
        Kk, Nk = w.shape
        in_specs.append(pl.BlockSpec((Kk, Nk), lambda i: (0, 0)))
        in_specs.append(pl.BlockSpec((1, Nk), lambda i: (0, 0)))
        flat_args += [w, b]
        flops += 2 * B_pad * Kk * Nk
        bytes_accessed += w.size * w.dtype.itemsize + b.size * b.dtype.itemsize

    out = pl.pallas_call(
        functools.partial(_fused_mlp_kernel, n_layers=n_layers),
        out_shape=jax.ShapeDtypeStruct((B_pad, N_out), jnp.float32),
        grid=(B_pad // tm,),
        in_specs=in_specs,
        out_specs=pl.BlockSpec((tm, N_out), lambda i: (i, 0)),
        compiler_params=pltpu.CompilerParams(
            dimension_semantics=("parallel",)),
        cost_estimate=pl.CostEstimate(
            flops=flops, transcendentals=0, bytes_accessed=bytes_accessed),
    )(*flat_args)

    return out[:B, :num_classes]


if __name__ == "__main__":
    # Small shapes consistent with the module's forward contract.
    batch = 2
    seq_len = 8
    in_features = 32
    num_classes = 10
    hidden_layers = (512, 512)

    key = jax.random.PRNGKey(0)
    key, kx = jax.random.split(key)
    x = jax.random.normal(kx, (batch, seq_len, in_features), jnp.float32)

    params = init_mlp_params(key, seq_len, in_features, num_classes,
                             hidden_layers=hidden_layers)
    packed = pack_params(params, seq_len, in_features)  # one-time prep

    logits = mlp_forward(x, packed, num_classes)
    logits = jax.block_until_ready(logits)
    assert logits.shape == (batch, num_classes)

    # Reference 1: same bf16 rounding as the kernel (tight tolerance).
    h = x.reshape(batch, -1)
    h = h.astype(jnp.bfloat16).astype(jnp.float32)
    for k, (w, b) in enumerate(params):
        wt = w.T.astype(jnp.bfloat16).astype(jnp.float32)
        h = jnp.dot(h, wt, preferred_element_type=jnp.float32) + b
        if k != len(params) - 1:
            h = jnp.maximum(h, 0.0).astype(jnp.bfloat16).astype(jnp.float32)
    assert jnp.allclose(logits, h, atol=1e-3, rtol=1e-3)

    # Reference 2: pure f32 math (same as PyTorch eval forward), loose tolerance
    # to account for bf16 inputs to the MXU.
    h32 = x.reshape(batch, -1)
    for k, (w, b) in enumerate(params):
        h32 = h32 @ w.T + b
        if k != len(params) - 1:
            h32 = jnp.maximum(h32, 0.0)
    assert jnp.allclose(logits, h32, atol=5e-2, rtol=5e-2)

    print("KERNEL_OK")
</pallas_src>

<mosaic_0001>
module attributes {stable_mosaic.version = 11 : i64} {
  func.func @_fused_mlp_kernel(%arg0: i32, %arg1: memref<8x256xbf16, #tpu.memory_space<vmem>>, %arg2: memref<256x512xbf16, #tpu.memory_space<vmem>>, %arg3: memref<1x512xf32, #tpu.memory_space<vmem>>, %arg4: memref<512x512xbf16, #tpu.memory_space<vmem>>, %arg5: memref<1x512xf32, #tpu.memory_space<vmem>>, %arg6: memref<512x128xbf16, #tpu.memory_space<vmem>>, %arg7: memref<1x128xf32, #tpu.memory_space<vmem>>, %arg8: memref<8x128xf32, #tpu.memory_space<vmem>>) attributes {dimension_semantics = [#tpu.dimension_semantics<parallel>], iteration_bounds = array<i64: 1>, scalar_prefetch = 0 : i64, scratch_operands = 0 : i64, tpu.core_type = #tpu.core_type<tc>, window_params = [{transform_indices = @transform_0, window_bounds = array<i64: 8, 256>}, {pipeline_mode = #tpu.pipeline_mode<synchronous>, transform_indices = @transform_1, window_bounds = array<i64: 256, 512>}, {pipeline_mode = #tpu.pipeline_mode<synchronous>, transform_indices = @transform_2, window_bounds = array<i64: 1, 512>}, {pipeline_mode = #tpu.pipeline_mode<synchronous>, transform_indices = @transform_3, window_bounds = array<i64: 512, 512>}, {pipeline_mode = #tpu.pipeline_mode<synchronous>, transform_indices = @transform_4, window_bounds = array<i64: 1, 512>}, {pipeline_mode = #tpu.pipeline_mode<synchronous>, transform_indices = @transform_5, window_bounds = array<i64: 512, 128>}, {pipeline_mode = #tpu.pipeline_mode<synchronous>, transform_indices = @transform_6, window_bounds = array<i64: 1, 128>}, {transform_indices = @transform_7, window_bounds = array<i64: 8, 128>}]} {
    %c0 = arith.constant 0 : index
    %c0_0 = arith.constant 0 : index
    %0 = vector.load %arg1[%c0, %c0_0] : memref<8x256xbf16, #tpu.memory_space<vmem>>, vector<8x256xbf16>
    %c0_1 = arith.constant 0 : index
    %c0_2 = arith.constant 0 : index
    %1 = vector.load %arg2[%c0_1, %c0_2] : memref<256x512xbf16, #tpu.memory_space<vmem>>, vector<256x512xbf16>
    %cst = arith.constant dense<0.000000e+00> : vector<8x512xf32>
    %2 = tpu.matmul %0, %1, %cst {dimension_numbers = #tpu.dot_dimension_numbers<[1], [0], [0], [1], [0, 0, 1, 1], [], []>} : vector<8x256xbf16>, vector<256x512xbf16>, vector<8x512xf32> -> vector<8x512xf32>
    %c0_3 = arith.constant 0 : index
    %c0_4 = arith.constant 0 : index
    %3 = vector.load %arg3[%c0_3, %c0_4] : memref<1x512xf32, #tpu.memory_space<vmem>>, vector<1x512xf32>
    %4 = vector.broadcast %3 : vector<1x512xf32> to vector<8x512xf32>
    %5 = arith.addf %2, %4 : vector<8x512xf32>
    %cst_5 = arith.constant 0.000000e+00 : f32
    %6 = vector.broadcast %cst_5 : f32 to vector<8x512xf32>
    %7 = arith.maximumf %5, %6 : vector<8x512xf32>
    %8 = arith.truncf %7 : vector<8x512xf32> to vector<8x512xbf16>
    %c0_6 = arith.constant 0 : index
    %c0_7 = arith.constant 0 : index
    %9 = vector.load %arg4[%c0_6, %c0_7] : memref<512x512xbf16, #tpu.memory_space<vmem>>, vector<512x512xbf16>
    %cst_8 = arith.constant dense<0.000000e+00> : vector<8x512xf32>
    %10 = tpu.matmul %8, %9, %cst_8 {dimension_numbers = #tpu.dot_dimension_numbers<[1], [0], [0], [1], [0, 0, 1, 1], [], []>} : vector<8x512xbf16>, vector<512x512xbf16>, vector<8x512xf32> -> vector<8x512xf32>
    %c0_9 = arith.constant 0 : index
    %c0_10 = arith.constant 0 : index
    %11 = vector.load %arg5[%c0_9, %c0_10] : memref<1x512xf32, #tpu.memory_space<vmem>>, vector<1x512xf32>
    %12 = vector.broadcast %11 : vector<1x512xf32> to vector<8x512xf32>
    %13 = arith.addf %10, %12 : vector<8x512xf32>
    %cst_11 = arith.constant 0.000000e+00 : f32
    %14 = vector.broadcast %cst_11 : f32 to vector<8x512xf32>
    %15 = arith.maximumf %13, %14 : vector<8x512xf32>
    %16 = arith.truncf %15 : vector<8x512xf32> to vector<8x512xbf16>
    %c0_12 = arith.constant 0 : index
    %c0_13 = arith.constant 0 : index
    %17 = vector.load %arg6[%c0_12, %c0_13] : memref<512x128xbf16, #tpu.memory_space<vmem>>, vector<512x128xbf16>
    %cst_14 = arith.constant dense<0.000000e+00> : vector<8x128xf32>
    %18 = tpu.matmul %16, %17, %cst_14 {dimension_numbers = #tpu.dot_dimension_numbers<[1], [0], [0], [1], [0, 0, 1, 1], [], []>} : vector<8x512xbf16>, vector<512x128xbf16>, vector<8x128xf32> -> vector<8x128xf32>
    %c0_15 = arith.constant 0 : index
    %c0_16 = arith.constant 0 : index
    %19 = vector.load %arg7[%c0_15, %c0_16] : memref<1x128xf32, #tpu.memory_space<vmem>>, vector<1x128xf32>
    %20 = vector.broadcast %19 : vector<1x128xf32> to vector<8x128xf32>
    %21 = arith.addf %18, %20 : vector<8x128xf32>
    %c0_17 = arith.constant 0 : index
    %c0_18 = arith.constant 0 : index
    %22 = vector.load %arg8[%c0_17, %c0_18] : memref<8x128xf32, #tpu.memory_space<vmem>>, vector<8x128xf32>
    tpu.vector_store %arg8[%c0_17, %c0_18], %21 {strides = array<i32>} : memref<8x128xf32, #tpu.memory_space<vmem>>, vector<8x128xf32>,
    return
  }
  func.func @transform_0(%arg0: i32) -> (i32, i32) {
    %c0_i32 = arith.constant 0 : i32
    %c0_i32_0 = arith.constant 0 : i32
    return %arg0, %c0_i32 : i32, i32
  }
  func.func @transform_1(%arg0: i32) -> (i32, i32) {
    %c0_i32 = arith.constant 0 : i32
    %c0_i32_0 = arith.constant 0 : i32
    %c0_i32_1 = arith.constant 0 : i32
    return %c0_i32, %c0_i32_0 : i32, i32
  }
  func.func @transform_2(%arg0: i32) -> (i32, i32) {
    %c0_i32 = arith.constant 0 : i32
    %c0_i32_0 = arith.constant 0 : i32
    %c0_i32_1 = arith.constant 0 : i32
    return %c0_i32, %c0_i32_0 : i32, i32
  }
  func.func @transform_3(%arg0: i32) -> (i32, i32) {
    %c0_i32 = arith.constant 0 : i32
    %c0_i32_0 = arith.constant 0 : i32
    %c0_i32_1 = arith.constant 0 : i32
    return %c0_i32, %c0_i32_0 : i32, i32
  }
  func.func @transform_4(%arg0: i32) -> (i32, i32) {
    %c0_i32 = arith.constant 0 : i32
    %c0_i32_0 = arith.constant 0 : i32
    %c0_i32_1 = arith.constant 0 : i32
    return %c0_i32, %c0_i32_0 : i32, i32
  }
  func.func @transform_5(%arg0: i32) -> (i32, i32) {
    %c0_i32 = arith.constant 0 : i32
    %c0_i32_0 = arith.constant 0 : i32
    %c0_i32_1 = arith.constant 0 : i32
    return %c0_i32, %c0_i32_0 : i32, i32
  }
  func.func @transform_6(%arg0: i32) -> (i32, i32) {
    %c0_i32 = arith.constant 0 : i32
    %c0_i32_0 = arith.constant 0 : i32
    %c0_i32_1 = arith.constant 0 : i32
    return %c0_i32, %c0_i32_0 : i32, i32
  }
  func.func @transform_7(%arg0: i32) -> (i32, i32) {
    %c0_i32 = arith.constant 0 : i32
    %c0_i32_0 = arith.constant 0 : i32
    return %arg0, %c0_i32 : i32, i32
  }
}

</mosaic_0001>

<bundles_post_ra>
// kernel: mlp_forward.1
= control target key start
LH: loop header
LB: loop body
LE: loop exit
PB: predicated region body
PF: predicated region fallthrough
CT: control target
= control target key end

     0   :  { %12 = vsyncpa [#allocation3], 0  ;;  %s2708_s0 = inlined_call_operand.vmem [shape: bf16[8,256], index: 0, kind: input, shape index: {}]   ;;  %s2709_s1 = inlined_call_operand.hbm [shape: bf16[256,512], index: 1, kind: input, shape index: {}]   ;;  %s2710_s2 = inlined_call_operand.vmem [shape: f32[1,512], index: 2, kind: input, shape index: {}]   ;;  %s2711_s3 = inlined_call_operand.hbm [shape: bf16[512,512], index: 3, kind: input, shape index: {}]   ;;  %s2712_s4 = inlined_call_operand.vmem [shape: f32[1,512], index: 4, kind: input, shape index: {}]   ;;  %s2713_s5 = inlined_call_operand.hbm [shape: bf16[512,128], index: 5, kind: input, shape index: {}]   ;;  %s2714_s6 = inlined_call_operand.vmem [shape: f32[1,128], index: 6, kind: input, shape index: {}]   ;;  %s2715_s7 = inlined_call_operand.vmem [shape: f32[8,128], index: 7, kind: output, shape index: {}]  }
   0x1   :  { %13 = vsyncpa [#allocation5], 0  ;;  %s2566_s24 = smov [#allocation4]   ;;  %s2567_s26 = smov [#allocation2]  }
   0x2   :  { %s35_s25 = sshll.u32 %s2566_s24, 4  ;;  %s21_s27 = sshll.u32 %s2567_s26, 4  ;;  %s36_s25 = int_to_ptr.vmem [resolvable:$true] %s35_s25  ;;  %s2613_s27 = int_to_ptr.vmem [resolvable:$true] %s21_s27 }
   0x3   :  { %s2496_s30 = scalar_lea.hbm %s2711_s3, 16384 }
   0x4   :  { %p2497_p0 = scmp.ne.s32.totalorder %s2711_s3, %s2496_s30  ;;  %p2500_p1 = scmp.lt.u32.totalorder %s2496_s30, %s2711_s3 }
   0x6   :  { %p2502_p2 = pnand %p2500_p1, %p2497_p0 }
   0x8   :  { %2505 = shalt.err (!%p2502_p2)
}
   0x9   :  { %s2506_s12 = scalar_lea.vmem %s36_s25, 16384  ;;  %p2511_p4 = scmp.lt.s32.totalorder %s36_s25, %s36_s25 }
   0xa   :  { %p2507_p3 = scmp.ne.s32.totalorder %s36_s25, %s2506_s12  ;;  %p2512_p5 = scmp.lt.s32.totalorder %s2506_s12, %s2506_s12 }
   0xc   :  { %p2513_p6 = por %p2512_p5, %p2511_p4 }
   0xe   :  { %p2514_p7 = pnand %p2513_p6, %p2507_p3 }
  0x10   :  { %2517 = shalt.err (!%p2514_p7)
}
  0x11   :  { %s2568_s13 = smov 256   ;;  %s2569_s14 = smov 16  }
  0x12   :  { %41 = dma.hbm_to_vmem [thread:$0]  %s2711_s3, 16384, %s36_s25, [#allocation5], %s2568_s13, %s2568_s13, %s2569_s14  }
  0x13   :  { %s2518_s19 = scalar_lea.hbm %s2709_s1, 8192 }
  0x14   :  { %p2519_p8 = scmp.ne.s32.totalorder %s2709_s1, %s2518_s19  ;;  %p2522_p9 = scmp.lt.u32.totalorder %s2518_s19, %s2709_s1 }
  0x16   :  { %p2524_p10 = pnand %p2522_p9, %p2519_p8 }
  0x18   :  { %2527 = shalt.err (!%p2524_p10)
}
  0x19   :  { %s2528_s24 = scalar_lea.vmem %s2613_s27, 8192  ;;  %p2533_p12 = scmp.lt.s32.totalorder %s2613_s27, %s2613_s27 }
  0x1a   :  { %p2529_p11 = scmp.ne.s32.totalorder %s2613_s27, %s2528_s24  ;;  %p2534_p13 = scmp.lt.s32.totalorder %s2528_s24, %s2528_s24 }
  0x1c   :  { %p2535_p0 = por %p2534_p13, %p2533_p12 }
  0x1e   :  { %p2536_p1 = pnand %p2535_p0, %p2529_p11 }
  0x20   :  { %2539 = shalt.err (!%p2536_p1)
}
  0x21   :  { %27 = dma.hbm_to_vmem [thread:$0]  %s2709_s1, 8192, %s2613_s27, [#allocation3], %s2568_s13, %s2568_s13, %s2569_s14  }
  0x22   :  { %s2570_s26 = smov [#allocation6]   ;;  %s2540_s8 = scalar_lea.hbm %s2713_s5, 4096 }
  0x23   :  { %s49_s28 = sshll.u32 %s2570_s26, 4  ;;  %p2541_p2 = scmp.ne.s32.totalorder %s2713_s5, %s2540_s8  ;;  %s50_s28 = int_to_ptr.vmem [resolvable:$true] %s49_s28 }
  0x24   :  { %p2544_p3 = scmp.lt.u32.totalorder %s2540_s8, %s2713_s5 }
  0x26   :  { %p2546_p4 = pnand %p2544_p3, %p2541_p2 }
  0x28   :  { %2549 = shalt.err (!%p2546_p4)
}
  0x29   :  { %s2550_s15 = scalar_lea.vmem %s50_s28, 4096  ;;  %p2555_p6 = scmp.lt.s32.totalorder %s50_s28, %s50_s28 }
  0x2a   :  { %p2551_p5 = scmp.ne.s32.totalorder %s50_s28, %s2550_s15  ;;  %p2556_p7 = scmp.lt.s32.totalorder %s2550_s15, %s2550_s15 }
  0x2c   :  { %p2557_p8 = por %p2556_p7, %p2555_p6 }
  0x2e   :  { %p2558_p9 = pnand %p2557_p8, %p2551_p5 }
  0x30   :  { %2561 = shalt.err (!%p2558_p9)
}
  0x31   :  { %s2571_s1 = smov 64   ;;  %s2572_s27 = smov 4  }
  0x32   :  { %55 = dma.hbm_to_vmem [thread:$0]  %s2713_s5, 4096, %s50_s28, [#allocation5], %s2571_s1, %s2571_s1, %s2572_s27  }
  0x33   :  { %2562 = dma.done.wait [#allocation3], 8192  }
  0x34   :  { %2563 = vsyncadd [#allocation3], 4294959104 }
  0x35   :  { %2564 = dma.done.wait [#allocation5], 20480  }
  0x36   :  { %2565 = vsyncadd [#allocation5], 4294946816  ;;  %v2174_v0 = vld [vmem:[#allocation2 + $0x4] ss:$16 sps:$4 sm:$0xff]   ;;  %v2176_v1 = vld [vmem:[#allocation2] ss:$16 sps:$4 sm:$0xff]  }
  0x37   :  { %482 = vmatprep.subr.bf16.mxu0 %v2174_v0  ;;  %v2177_v2 = vld [vmem:[#allocation2 + $0x24] ss:$16 sps:$4 sm:$0xff]   ;;  %v2179_v3 = vld [vmem:[#allocation2 + $0x20] ss:$16 sps:$4 sm:$0xff]   ;;  %v2221_v14 = vld [vmem:[#allocation2 + $0xc] ss:$16 sps:$4 sm:$0xff]  }
  0x38   :  { %483 = vmatpush1.bf16.msra.mxu0 %v2176_v1  ;;  %v2180_v4 = vld [vmem:[#allocation2 + $0x44] ss:$16 sps:$4 sm:$0xff]   ;;  %v2182_v5 = vld [vmem:[#allocation2 + $0x40] ss:$16 sps:$4 sm:$0xff]   ;;  %v2224_v16 = vld [vmem:[#allocation2 + $0x8] ss:$16 sps:$4 sm:$0xff]   ;;  %523 = vmatprep.subr.bf16.mxu1 %v2221_v14 }
  0x39   :  { %484 = vmatprep.subr.bf16.mxu0 %v2177_v2  ;;  %v2183_v6 = vld [vmem:[#allocation2 + $0x64] ss:$16 sps:$4 sm:$0xff]   ;;  %v2185_v7 = vld [vmem:[#allocation2 + $0x60] ss:$16 sps:$4 sm:$0xff]   ;;  %v2227_v19 = vld [vmem:[#allocation2 + $0x2c] ss:$16 sps:$4 sm:$0xff]   ;;  %524 = vmatpush1.bf16.msra.mxu1 %v2224_v16 }
  0x3a   :  { %v2186_v8 = vld [vmem:[#allocation2 + $0x84] ss:$16 sps:$4 sm:$0xff]   ;;  %v2188_v9 = vld [vmem:[#allocation2 + $0x80] ss:$16 sps:$4 sm:$0xff]   ;;  %v2229_v20 = vld [vmem:[#allocation2 + $0x28] ss:$16 sps:$4 sm:$0xff]   ;;  %525 = vmatprep.subr.bf16.mxu1 %v2227_v19 }
  0x3b   :  { %v2189_v10 = vld [vmem:[#allocation2 + $0xa4] ss:$16 sps:$4 sm:$0xff]   ;;  %v2191_v11 = vld [vmem:[#allocation2 + $0xa0] ss:$16 sps:$4 sm:$0xff]   ;;  %v2230_v21 = vld [vmem:[#allocation2 + $0x4c] ss:$16 sps:$4 sm:$0xff]  }
  0x3c   :  { %485 = vmatpush1.bf16.msra.mxu0 %v2179_v3  ;;  %v2192_v12 = vld [vmem:[#allocation2 + $0xc4] ss:$16 sps:$4 sm:$0xff]   ;;  %v2194_v13 = vld [vmem:[#allocation2 + $0xc0] ss:$16 sps:$4 sm:$0xff]   ;;  %v2232_v24 = vld [vmem:[#allocation2 + $0x48] ss:$16 sps:$4 sm:$0xff]  }
  0x3d   :  { %486 = vmatprep.subr.bf16.mxu0 %v2180_v4  ;;  %v2195_v15 = vld [vmem:[#allocation2 + $0xe4] ss:$16 sps:$4 sm:$0xff]   ;;  %v2197_v22 = vld [vmem:[#allocation2 + $0xe0] ss:$16 sps:$4 sm:$0xff]   ;;  %526 = vmatpush1.bf16.msra.mxu1 %v2229_v20  ;;  %v2233_v25 = vld [vmem:[#allocation2 + $0x6c] ss:$16 sps:$4 sm:$0xff]  }
  0x3e   :  { %v2659_v17 = vld [vmem:[%s2708_s0] sm:$0xff]  ;;  %527 = vmatprep.subr.bf16.mxu1 %v2230_v21  ;;  %v2235_v28 = vld [vmem:[#allocation2 + $0x68] ss:$16 sps:$4 sm:$0xff]   ;;  %v2236_v29 = vld [vmem:[#allocation2 + $0x8c] ss:$16 sps:$4 sm:$0xff]  }
  0x3f   :  { %v1885_v18 = vcombine.high %v2659_v17, %v2659_v17  ;;  %v2198_v23 = vld [vmem:[#allocation2 + $0x104] ss:$16 sps:$4 sm:$0xff]   ;;  %v2200_v26 = vld [vmem:[#allocation2 + $0x100] ss:$16 sps:$4 sm:$0xff]   ;;  %v2238_v32 = vld [vmem:[#allocation2 + $0x88] ss:$16 sps:$4 sm:$0xff]   ;;  %v1884_v58 = vcombine.low %v2659_v17, %v2659_v17 }
  0x40   :  { %487 = vmatpush1.bf16.msra.mxu0 %v2182_v5  ;;  %v2201_v27 = vld [vmem:[#allocation2 + $0x124] ss:$16 sps:$4 sm:$0xff]   ;;  %v2203_v30 = vld [vmem:[#allocation2 + $0x120] ss:$16 sps:$4 sm:$0xff]   ;;  %v2239_v33 = vld [vmem:[#allocation2 + $0xac] ss:$16 sps:$4 sm:$0xff]  }
  0x41   :  { %488 = vmatprep.subr.bf16.mxu0 %v2183_v6  ;;  %514 = vmatprep.mubr.bf16.mxu0 %v1885_v18  ;;  %v2204_v31 = vld [vmem:[#allocation2 + $0x144] ss:$16 sps:$4 sm:$0xff]   ;;  %v2206_v34 = vld [vmem:[#allocation2 + $0x140] ss:$16 sps:$4 sm:$0xff]   ;;  %v2241_v36 = vld [vmem:[#allocation2 + $0xa8] ss:$16 sps:$4 sm:$0xff]  }
  0x42   :  { %555 = vmatprep.mubr.bf16.mxu1 %v1885_v18  ;;  %528 = vmatpush1.bf16.msra.mxu1 %v2232_v24  ;;  %v2207_v35 = vld [vmem:[#allocation2 + $0x164] ss:$16 sps:$4 sm:$0xff]   ;;  %v2242_v37 = vld [vmem:[#allocation2 + $0xcc] ss:$16 sps:$4 sm:$0xff]   ;;  %v2209_v38 = vld [vmem:[#allocation2 + $0x160] ss:$16 sps:$4 sm:$0xff]  }
  0x43   :  { %529 = vmatprep.subr.bf16.mxu1 %v2233_v25  ;;  %v2210_v39 = vld [vmem:[#allocation2 + $0x184] ss:$16 sps:$4 sm:$0xff]   ;;  %v2244_v40 = vld [vmem:[#allocation2 + $0xc8] ss:$16 sps:$4 sm:$0xff]   ;;  %v2245_v41 = vld [vmem:[#allocation2 + $0xec] ss:$16 sps:$4 sm:$0xff]  }
  0x44   :  { %489 = vmatpush1.bf16.msra.mxu0 %v2185_v7  ;;  %v2212_v42 = vld [vmem:[#allocation2 + $0x180] ss:$16 sps:$4 sm:$0xff]   ;;  %v2213_v43 = vld [vmem:[#allocation2 + $0x1a4] ss:$16 sps:$4 sm:$0xff]   ;;  %v2247_v44 = vld [vmem:[#allocation2 + $0xe8] ss:$16 sps:$4 sm:$0xff]  }
  0x45   :  { %490 = vmatprep.subr.bf16.mxu0 %v2186_v8  ;;  %v2248_v45 = vld [vmem:[#allocation2 + $0x10c] ss:$16 sps:$4 sm:$0xff]   ;;  %v2215_v46 = vld [vmem:[#allocation2 + $0x1a0] ss:$16 sps:$4 sm:$0xff]   ;;  %v2216_v47 = vld [vmem:[#allocation2 + $0x1c4] ss:$16 sps:$4 sm:$0xff]  }
  0x46   :  { %530 = vmatpush1.bf16.msra.mxu1 %v2235_v28  ;;  %v2250_v48 = vld [vmem:[#allocation2 + $0x108] ss:$16 sps:$4 sm:$0xff]   ;;  %v2251_v49 = vld [vmem:[#allocation2 + $0x12c] ss:$16 sps:$4 sm:$0xff]   ;;  %v2218_v50 = vld [vmem:[#allocation2 + $0x1c0] ss:$16 sps:$4 sm:$0xff]  }
  0x47   :  { %531 = vmatprep.subr.bf16.mxu1 %v2236_v29  ;;  %v2219_v51 = vld [vmem:[#allocation2 + $0x1e4] ss:$16 sps:$4 sm:$0xff]   ;;  %v2253_v52 = vld [vmem:[#allocation2 + $0x128] ss:$16 sps:$4 sm:$0xff]   ;;  %v2254_v53 = vld [vmem:[#allocation2 + $0x14c] ss:$16 sps:$4 sm:$0xff]  }
  0x48   :  { %491 = vmatpush1.bf16.msra.mxu0 %v2188_v9  ;;  %v2223_v54 = vld [vmem:[#allocation2 + $0x1e0] ss:$16 sps:$4 sm:$0xff]   ;;  %v2256_v55 = vld [vmem:[#allocation2 + $0x148] ss:$16 sps:$4 sm:$0xff]   ;;  %v2274_v56 = vld [vmem:[#allocation4 + $0x4] ss:$16 sps:$4 sm:$0xff]  }
  0x49   :  { %492 = vmatprep.subr.bf16.mxu0 %v2189_v10  ;;  %v2257_v57 = vld [vmem:[#allocation2 + $0x16c] ss:$16 sps:$4 sm:$0xff]   ;;  %v2259_v59 = vld [vmem:[#allocation2 + $0x168] ss:$16 sps:$4 sm:$0xff]   ;;  %v2272_v60 = vld [vmem:[#allocation4] ss:$16 sps:$4 sm:$0xff]  }
  0x4a   :  { %532 = vmatpush1.bf16.msra.mxu1 %v2238_v32  ;;  %v2280_v61 = vld [vmem:[#allocation4 + $0x24] ss:$16 sps:$4 sm:$0xff]   ;;  %v2260_v62 = vld [vmem:[#allocation2 + $0x18c] ss:$16 sps:$4 sm:$0xff]   ;;  %v2262_v63 = vld [vmem:[#allocation2 + $0x188] ss:$16 sps:$4 sm:$0xff]  }
  0x4b   :  { %533 = vmatprep.subr.bf16.mxu1 %v2239_v33  ;;  %v2278_v0 = vld [vmem:[#allocation4 + $0x20] ss:$16 sps:$4 sm:$0xff]   ;;  %v2286_v1 = vld [vmem:[#allocation4 + $0x44] ss:$16 sps:$4 sm:$0xff]   ;;  %v2263_v2 = vld [vmem:[#allocation2 + $0x1ac] ss:$16 sps:$4 sm:$0xff]  }
  0x4c   :  { %493 = vmatpush1.bf16.msra.mxu0 %v2191_v11  ;;  %v2265_v3 = vld [vmem:[#allocation2 + $0x1a8] ss:$16 sps:$4 sm:$0xff]   ;;  %v2284_v4 = vld [vmem:[#allocation4 + $0x40] ss:$16 sps:$4 sm:$0xff]   ;;  %v2292_v5 = vld [vmem:[#allocation4 + $0x64] ss:$16 sps:$4 sm:$0xff]  }
  0x4d   :  { %494 = vmatprep.subr.bf16.mxu0 %v2192_v12  ;;  %v2266_v6 = vld [vmem:[#allocation2 + $0x1cc] ss:$16 sps:$4 sm:$0xff]   ;;  %v2268_v7 = vld [vmem:[#allocation2 + $0x1c8] ss:$16 sps:$4 sm:$0xff]   ;;  %v2290_v8 = vld [vmem:[#allocation4 + $0x60] ss:$16 sps:$4 sm:$0xff]  }
  0x4e   :  { %534 = vmatpush1.bf16.msra.mxu1 %v2241_v36  ;;  %v2298_v9 = vld [vmem:[#allocation4 + $0x84] ss:$16 sps:$4 sm:$0xff]   ;;  %v2269_v10 = vld [vmem:[#allocation2 + $0x1ec] ss:$16 sps:$4 sm:$0xff]   ;;  %v2271_v11 = vld [vmem:[#allocation2 + $0x1e8] ss:$16 sps:$4 sm:$0xff]  }
  0x4f   :  { %535 = vmatprep.subr.bf16.mxu1 %v2242_v37  ;;  %v2296_v12 = vld [vmem:[#allocation4 + $0x80] ss:$16 sps:$4 sm:$0xff]   ;;  %v2304_v14 = vld [vmem:[#allocation4 + $0xa4] ss:$16 sps:$4 sm:$0xff]   ;;  %v2275_v16 = vld [vmem:[#allocation4 + $0x8] ss:$16 sps:$4 sm:$0xff]  }
  0x50   :  { %495 = vmatpush1.bf16.msra.mxu0 %v2194_v13  ;;  %v2277_v13 = vld [vmem:[#allocation4 + $0xc] ss:$16 sps:$4 sm:$0xff]   ;;  %v2310_v17 = vld [vmem:[#allocation4 + $0xc4] ss:$16 sps:$4 sm:$0xff]   ;;  %v2308_v19 = vld [vmem:[#allocation4 + $0xc0] ss:$16 sps:$4 sm:$0xff]  }
  0x51   :  { %496 = vmatprep.subr.bf16.mxu0 %v2195_v15  ;;  %v2302_v15 = vld [vmem:[#allocation4 + $0xa0] ss:$16 sps:$4 sm:$0xff]   ;;  %v2283_v18 = vld [vmem:[#allocation4 + $0x2c] ss:$16 sps:$4 sm:$0xff]   ;;  %v2281_v20 = vld [vmem:[#allocation4 + $0x28] ss:$16 sps:$4 sm:$0xff]  }
  0x52   :  { %536 = vmatpush1.bf16.msra.mxu1 %v2244_v40  ;;  %v2316_v21 = vld [vmem:[#allocation4 + $0xe4] ss:$16 sps:$4 sm:$0xff]   ;;  %v2287_v24 = vld [vmem:[#allocation4 + $0x48] ss:$16 sps:$4 sm:$0xff]  }
  0x53   :  { %537 = vmatprep.subr.bf16.mxu1 %v2245_v41  ;;  %v2322_v25 = vld [vmem:[#allocation4 + $0x104] ss:$16 sps:$4 sm:$0xff]   ;;  %v2293_v28 = vld [vmem:[#allocation4 + $0x68] ss:$16 sps:$4 sm:$0xff]  }
  0x54   :  { %497 = vmatpush1.bf16.msra.mxu0 %v2197_v22  ;;  %v2289_v22 = vld [vmem:[#allocation4 + $0x4c] ss:$16 sps:$4 sm:$0xff]   ;;  %v2328_v29 = vld [vmem:[#allocation4 + $0x124] ss:$16 sps:$4 sm:$0xff]   ;;  %v2299_v32 = vld [vmem:[#allocation4 + $0x88] ss:$16 sps:$4 sm:$0xff]  }
  0x55   :  { %498 = vmatprep.subr.bf16.mxu0 %v2198_v23  ;;  %v2314_v23 = vld [vmem:[#allocation4 + $0xe0] ss:$16 sps:$4 sm:$0xff]   ;;  %v2334_v33 = vld [vmem:[#allocation4 + $0x144] ss:$16 sps:$4 sm:$0xff]   ;;  %v2305_v36 = vld [vmem:[#allocation4 + $0xa8] ss:$16 sps:$4 sm:$0xff]  }
  0x56   :  { %538 = vmatpush1.bf16.msra.mxu1 %v2247_v44  ;;  %v2340_v37 = vld [vmem:[#allocation4 + $0x164] ss:$16 sps:$4 sm:$0xff]   ;;  %v2311_v40 = vld [vmem:[#allocation4 + $0xc8] ss:$16 sps:$4 sm:$0xff]  }
  0x57   :  { %539 = vmatprep.subr.bf16.mxu1 %v2248_v45  ;;  %v2346_v41 = vld [vmem:[#allocation4 + $0x184] ss:$16 sps:$4 sm:$0xff]   ;;  %v2317_v44 = vld [vmem:[#allocation4 + $0xe8] ss:$16 sps:$4 sm:$0xff]  }
  0x58   :  { %499 = vmatpush1.bf16.msra.mxu0 %v2200_v26  ;;  %v2295_v26 = vld [vmem:[#allocation4 + $0x6c] ss:$16 sps:$4 sm:$0xff]   ;;  %v2352_v45 = vld [vmem:[#allocation4 + $0x1a4] ss:$16 sps:$4 sm:$0xff]  }
  0x59   :  { %500 = vmatprep.subr.bf16.mxu0 %v2201_v27  ;;  %v2320_v27 = vld [vmem:[#allocation4 + $0x100] ss:$16 sps:$4 sm:$0xff]  }
  0x5a   :  { %540 = vmatpush1.bf16.msra.mxu1 %v2250_v48  ;;  %v2323_v48 = vld [vmem:[#allocation4 + $0x108] ss:$16 sps:$4 sm:$0xff]  }
  0x5b   :  { %541 = vmatprep.subr.bf16.mxu1 %v2251_v49  ;;  %v2331_v49 = vld [vmem:[#allocation4 + $0x12c] ss:$16 sps:$4 sm:$0xff]  }
  0x5c   :  { %501 = vmatpush1.bf16.msra.mxu0 %v2203_v30  ;;  %v2301_v30 = vld [vmem:[#allocation4 + $0x8c] ss:$16 sps:$4 sm:$0xff]  }
  0x5d   :  { %502 = vmatprep.subr.bf16.mxu0 %v2204_v31  ;;  %v2326_v31 = vld [vmem:[#allocation4 + $0x120] ss:$16 sps:$4 sm:$0xff]  }
  0x5e   :  { %542 = vmatpush1.bf16.msra.mxu1 %v2253_v52  ;;  %v2335_v52 = vld [vmem:[#allocation4 + $0x148] ss:$16 sps:$4 sm:$0xff]  }
  0x5f   :  { %543 = vmatprep.subr.bf16.mxu1 %v2254_v53  ;;  %v2343_v53 = vld [vmem:[#allocation4 + $0x16c] ss:$16 sps:$4 sm:$0xff]  }
  0x60   :  { %503 = vmatpush1.bf16.msra.mxu0 %v2206_v34  ;;  %v2307_v34 = vld [vmem:[#allocation4 + $0xac] ss:$16 sps:$4 sm:$0xff]  }
  0x61   :  { %504 = vmatprep.subr.bf16.mxu0 %v2207_v35  ;;  %v2332_v35 = vld [vmem:[#allocation4 + $0x140] ss:$16 sps:$4 sm:$0xff]  }
  0x62   :  { %544 = vmatpush1.bf16.msra.mxu1 %v2256_v55  ;;  %v2349_v55 = vld [vmem:[#allocation4 + $0x18c] ss:$16 sps:$4 sm:$0xff]  }
  0x63   :  { %545 = vmatprep.subr.bf16.mxu1 %v2257_v57  ;;  %v2355_v57 = vld [vmem:[#allocation4 + $0x1ac] ss:$16 sps:$4 sm:$0xff]  }
  0x64   :  { %505 = vmatpush1.bf16.msra.mxu0 %v2209_v38  ;;  %v2313_v38 = vld [vmem:[#allocation4 + $0xcc] ss:$16 sps:$4 sm:$0xff]  }
  0x65   :  { %506 = vmatprep.subr.bf16.mxu0 %v2210_v39  ;;  %v2338_v39 = vld [vmem:[#allocation4 + $0x160] ss:$16 sps:$4 sm:$0xff]  }
  0x66   :  { %546 = vmatpush1.bf16.msra.mxu1 %v2259_v59  ;;  %v2358_v59 = vld [vmem:[#allocation4 + $0x1c4] ss:$16 sps:$4 sm:$0xff]  }
  0x67   :  { %547 = vmatprep.subr.bf16.mxu1 %v2260_v62  ;;  %v2359_v62 = vld [vmem:[#allocation4 + $0x1c8] ss:$16 sps:$4 sm:$0xff]  }
  0x68   :  { %507 = vmatpush1.bf16.msra.mxu0 %v2212_v42  ;;  %v2319_v42 = vld [vmem:[#allocation4 + $0xec] ss:$16 sps:$4 sm:$0xff]  }
  0x69   :  { %508 = vmatprep.subr.bf16.mxu0 %v2213_v43  ;;  %v2344_v43 = vld [vmem:[#allocation4 + $0x180] ss:$16 sps:$4 sm:$0xff]  }
  0x6a   :  { %548 = vmatpush1.bf16.msra.mxu1 %v2262_v63  ;;  %v2364_v63 = vld [vmem:[#allocation4 + $0x1e4] ss:$16 sps:$4 sm:$0xff]  }
  0x6b   :  { %549 = vmatprep.subr.bf16.mxu1 %v2263_v2  ;;  %v2365_v2 = vld [vmem:[#allocation4 + $0x1e8] ss:$16 sps:$4 sm:$0xff]  }
  0x6c   :  { %509 = vmatpush1.bf16.msra.mxu0 %v2215_v46  ;;  %v2325_v46 = vld [vmem:[#allocation4 + $0x10c] ss:$16 sps:$4 sm:$0xff]  }
  0x6d   :  { %510 = vmatprep.subr.bf16.mxu0 %v2216_v47  ;;  %v2350_v47 = vld [vmem:[#allocation4 + $0x1a0] ss:$16 sps:$4 sm:$0xff]  }
  0x6e   :  { %550 = vmatpush1.bf16.msra.mxu1 %v2265_v3  ;;  %v2370_v3 = vld [vmem:[#allocation4 + $0x204] ss:$16 sps:$4 sm:$0xff]  }
  0x6f   :  { %551 = vmatprep.subr.bf16.mxu1 %v2266_v6 }
  0x70   :  { %511 = vmatpush1.bf16.msra.mxu0 %v2218_v50  ;;  %v2329_v50 = vld [vmem:[#allocation4 + $0x128] ss:$16 sps:$4 sm:$0xff]  }
  0x71   :  { %512 = vmatprep.subr.bf16.mxu0 %v2219_v51  ;;  %v2337_v51 = vld [vmem:[#allocation4 + $0x14c] ss:$16 sps:$4 sm:$0xff]  }
  0x72   :  { %552 = vmatpush1.bf16.msra.mxu1 %v2268_v7 }
  0x73   :  { %553 = vmatprep.subr.bf16.mxu1 %v2269_v10 }
  0x74   :  { %513 = vmatpush1.bf16.msra.mxu0 %v2223_v54  ;;  %v2341_v54 = vld [vmem:[#allocation4 + $0x168] ss:$16 sps:$4 sm:$0xff]  }
  0x75   :  { %1362 = vmatprep.subr.bf16.mxu0 %v2274_v56  ;;  %v2347_v56 = vld [vmem:[#allocation4 + $0x188] ss:$16 sps:$4 sm:$0xff]  }
  0x76   :  { %554 = vmatpush1.bf16.msra.mxu1 %v2271_v11 }
  0x77   :  { %515 = vmatmul.mubr.bf16.vlgmr.msra.gmra.mrb[0].mxu0 %v1884_v58  ;;  %1444 = vmatprep.subr.bf16.mxu1 %v2277_v13 }
  0x78   :  { %1363 = vmatpush1.bf16.msra.mxu0 %v2272_v60  ;;  %v2361_v60 = vld [vmem:[#allocation4 + $0x1cc] ss:$16 sps:$4 sm:$0xff]  }
  0x79   :  { %1364 = vmatprep.subr.bf16.mxu0 %v2280_v61  ;;  %556 = vmatmul.mubr.bf16.vlgmr.msra.gmra.mrb[0].mxu1 %v1884_v58  ;;  %v2353_v58 = vld [vmem:[#allocation4 + $0x1a8] ss:$16 sps:$4 sm:$0xff]   ;;  %v2356_v61 = vld [vmem:[#allocation4 + $0x1c0] ss:$16 sps:$4 sm:$0xff]  }
  0x7a   :  { %1445 = vmatpush1.bf16.msra.mxu1 %v2275_v16 }
  0x7b   :  { %1446 = vmatprep.subr.bf16.mxu1 %v2283_v18 }
  0x7c   :  { %1365 = vmatpush1.bf16.msra.mxu0 %v2278_v0  ;;  %v2367_v0 = vld [vmem:[#allocation4 + $0x1ec] ss:$16 sps:$4 sm:$0xff]  }
  0x7d   :  { %1366 = vmatprep.subr.bf16.mxu0 %v2286_v1  ;;  %v2362_v1 = vld [vmem:[#allocation4 + $0x1e0] ss:$16 sps:$4 sm:$0xff]  }
  0x7e   :  { %1447 = vmatpush1.bf16.msra.mxu1 %v2281_v20 }
  0x7f   :  { %1448 = vmatprep.subr.bf16.mxu1 %v2289_v22  ;;  %v2371_v22 = vld [vmem:[#allocation4 + $0x208] ss:$16 sps:$4 sm:$0xff]  }
  0x80   :  { %1367 = vmatpush1.bf16.msra.mxu0 %v2284_v4  ;;  %v2373_v4 = vld [vmem:[#allocation4 + $0x20c] ss:$16 sps:$4 sm:$0xff]  }
  0x81   :  { %1368 = vmatprep.subr.bf16.mxu0 %v2292_v5  ;;  %v135_v5 = vlaneseq }
  0x82   :  { %1449 = vmatpush1.bf16.msra.mxu1 %v2287_v24  ;;  %v2376_v24 = vld [vmem:[#allocation4 + $0x224] ss:$16 sps:$4 sm:$0xff]  }
  0x83   :  { %1450 = vmatprep.subr.bf16.mxu1 %v2295_v26  ;;  %v2665_v6 = vshrl.u32 %v135_v5, 7  ;;  %v2374_v26 = vld [vmem:[#allocation4 + $0x220] ss:$16 sps:$4 sm:$0xff]   ;;  %v2430_v5 = vld [vmem:[#allocation4 + $0x344] ss:$16 sps:$4 sm:$0xff]  }
  0x84   :  { %1369 = vmatpush1.bf16.msra.mxu0 %v2290_v8  ;;  %v2671_v8 = vld [vmem:[%s2710_s2] sm:$0xf] }
  0x85   :  { %1370 = vmatprep.subr.bf16.mxu0 %v2298_v9  ;;  %v137_v7 = vsub.s32 0, %v2665_v6  ;;  %v141_v9 = vsub.s32 1, %v2665_v6 }
  0x86   :  { %1451 = vmatpush1.bf16.msra.mxu1 %v2293_v28  ;;  %v2382_v28 = vld [vmem:[#allocation4 + $0x244] ss:$16 sps:$4 sm:$0xff]  }
  0x87   :  { %1452 = vmatprep.subr.bf16.mxu1 %v2301_v30  ;;  %v138_v10 = vrot.slane %v2671_v8, %v137_v7  ;;  %v142_v11 = vrot.slane %v2671_v8, %v141_v9  ;;  %v2380_v30 = vld [vmem:[#allocation4 + $0x240] ss:$16 sps:$4 sm:$0xff]  }
  0x88   :  { %1371 = vmatpush1.bf16.msra.mxu0 %v2296_v12 }
  0x89   :  { %1372 = vmatprep.subr.bf16.mxu0 %v2304_v14 }
  0x8a   :  { %1453 = vmatpush1.bf16.msra.mxu1 %v2299_v32  ;;  %v2388_v32 = vld [vmem:[#allocation4 + $0x264] ss:$16 sps:$4 sm:$0xff]  }
  0x8b   :  { %1454 = vmatprep.subr.bf16.mxu1 %v2307_v34  ;;  %v149_v34 = vsub.s32 3, %v2665_v6 }
  0x8c   :  { %1373 = vmatpush1.bf16.msra.mxu0 %v2302_v15 }
  0x8d   :  { %1374 = vmatprep.subr.bf16.mxu0 %v2310_v17 }
  0x8e   :  { %1455 = vmatpush1.bf16.msra.mxu1 %v2305_v36  ;;  %v2389_v36 = vld [vmem:[#allocation4 + $0x268] ss:$16 sps:$4 sm:$0xff]  }
  0x8f   :  { %1456 = vmatprep.subr.bf16.mxu1 %v2313_v38  ;;  %v2397_v38 = vld [vmem:[#allocation4 + $0x28c] ss:$16 sps:$4 sm:$0xff]  }
  0x90   :  { %1375 = vmatpush1.bf16.msra.mxu0 %v2308_v19 }
  0x91   :  { %1376 = vmatprep.subr.bf16.mxu0 %v2316_v21  ;;  %v2368_v21 = vld [vmem:[#allocation4 + $0x200] ss:$16 sps:$4 sm:$0xff]  }
  0x92   :  { %1457 = vmatpush1.bf16.msra.mxu1 %v2311_v40 }
  0x93   :  { %1458 = vmatprep.subr.bf16.mxu1 %v2319_v42  ;;  %v2395_v42 = vld [vmem:[#allocation4 + $0x288] ss:$16 sps:$4 sm:$0xff]  }
  0x94   :  { %1377 = vmatpush1.bf16.msra.mxu0 %v2314_v23 }
  0x95   :  { %1378 = vmatprep.subr.bf16.mxu0 %v2322_v25  ;;  %v2379_v25 = vld [vmem:[#allocation4 + $0x22c] ss:$16 sps:$4 sm:$0xff]  }
  0x96   :  { %1459 = vmatpush1.bf16.msra.mxu1 %v2317_v44  ;;  %v2400_v44 = vld [vmem:[#allocation4 + $0x2a4] ss:$16 sps:$4 sm:$0xff]  }
  0x97   :  { %1460 = vmatprep.subr.bf16.mxu1 %v2325_v46 }
  0x98   :  { %1379 = vmatpush1.bf16.msra.mxu0 %v2320_v27  ;;  %v2377_v27 = vld [vmem:[#allocation4 + $0x228] ss:$16 sps:$4 sm:$0xff]  }
  0x99   :  { %1380 = vmatprep.subr.bf16.mxu0 %v2328_v29  ;;  %v2385_v29 = vld [vmem:[#allocation4 + $0x24c] ss:$16 sps:$4 sm:$0xff]  }
  0x9a   :  { %1461 = vmatpush1.bf16.msra.mxu1 %v2323_v48 }
  0x9b   :  { %1462 = vmatprep.subr.bf16.mxu1 %v2331_v49 }
  0x9c   :  { %1381 = vmatpush1.bf16.msra.mxu0 %v2326_v31  ;;  %v2383_v31 = vld [vmem:[#allocation4 + $0x248] ss:$16 sps:$4 sm:$0xff]  }
  0x9d   :  { %1382 = vmatprep.subr.bf16.mxu0 %v2334_v33  ;;  %v2391_v33 = vld [vmem:[#allocation4 + $0x26c] ss:$16 sps:$4 sm:$0xff]  }
  0x9e   :  { %1463 = vmatpush1.bf16.msra.mxu1 %v2329_v50  ;;  %v2398_v50 = vld [vmem:[#allocation4 + $0x2a0] ss:$16 sps:$4 sm:$0xff]  }
  0x9f   :  { %1464 = vmatprep.subr.bf16.mxu1 %v2337_v51  ;;  %v2401_v51 = vld [vmem:[#allocation4 + $0x2a8] ss:$16 sps:$4 sm:$0xff]  }
  0xa0   :  { %1383 = vmatpush1.bf16.msra.mxu0 %v2332_v35  ;;  %v2386_v35 = vld [vmem:[#allocation4 + $0x260] ss:$16 sps:$4 sm:$0xff]  }
  0xa1   :  { %1384 = vmatprep.subr.bf16.mxu0 %v2340_v37  ;;  %v2394_v37 = vld [vmem:[#allocation4 + $0x284] ss:$16 sps:$4 sm:$0xff]  }
  0xa2   :  { %1465 = vmatpush1.bf16.msra.mxu1 %v2335_v52  ;;  %v2406_v52 = vld [vmem:[#allocation4 + $0x2c4] ss:$16 sps:$4 sm:$0xff]  }
  0xa3   :  { %1466 = vmatprep.subr.bf16.mxu1 %v2343_v53  ;;  %v2409_v53 = vld [vmem:[#allocation4 + $0x2cc] ss:$16 sps:$4 sm:$0xff]  }
  0xa4   :  { %1385 = vmatpush1.bf16.msra.mxu0 %v2338_v39  ;;  %v150_v39 = vrot.slane %v2671_v8, %v149_v34 }
  0xa5   :  { %1386 = vmatprep.subr.bf16.mxu0 %v2346_v41  ;;  %v2392_v41 = vld [vmem:[#allocation4 + $0x280] ss:$16 sps:$4 sm:$0xff]  }
  0xa6   :  { %1467 = vmatpush1.bf16.msra.mxu1 %v2341_v54 }
  0xa7   :  { %1468 = vmatprep.subr.bf16.mxu1 %v2349_v55  ;;  %v2404_v55 = vld [vmem:[#allocation4 + $0x2c0] ss:$16 sps:$4 sm:$0xff]  }
  0xa8   :  { %1387 = vmatpush1.bf16.msra.mxu0 %v2344_v43 }
  0xa9   :  { %1388 = vmatprep.subr.bf16.mxu0 %v2352_v45  ;;  %v2403_v45 = vld [vmem:[#allocation4 + $0x2ac] ss:$16 sps:$4 sm:$0xff]  }
  0xaa   :  { %1469 = vmatpush1.bf16.msra.mxu1 %v2347_v56  ;;  %v2407_v56 = vld [vmem:[#allocation4 + $0x2c8] ss:$16 sps:$4 sm:$0xff]  }
  0xab   :  { %1470 = vmatprep.subr.bf16.mxu1 %v2355_v57  ;;  %v2412_v57 = vld [vmem:[#allocation4 + $0x2e4] ss:$16 sps:$4 sm:$0xff]  }
  0xac   :  { %1389 = vmatpush1.bf16.msra.mxu0 %v2350_v47 }
  0xad   :  { %1390 = vmatprep.subr.bf16.mxu0 %v2358_v59  ;;  %v2410_v59 = vld [vmem:[#allocation4 + $0x2e0] ss:$16 sps:$4 sm:$0xff]  }
  0xae   :  { %1471 = vmatpush1.bf16.msra.mxu1 %v2353_v58  ;;  %v2415_v58 = vld [vmem:[#allocation4 + $0x2ec] ss:$16 sps:$4 sm:$0xff]  }
  0xaf   :  { %1472 = vmatprep.subr.bf16.mxu1 %v2361_v60  ;;  %v2413_v60 = vld [vmem:[#allocation4 + $0x2e8] ss:$16 sps:$4 sm:$0xff]  }
  0xb0   :  { %1391 = vmatpush1.bf16.msra.mxu0 %v2356_v61  ;;  %v2418_v61 = vld [vmem:[#allocation4 + $0x304] ss:$16 sps:$4 sm:$0xff]  }
  0xb1   :  { %1392 = vmatprep.subr.bf16.mxu0 %v2364_v63  ;;  %v2416_v63 = vld [vmem:[#allocation4 + $0x300] ss:$16 sps:$4 sm:$0xff]  }
  0xb2   :  { %1473 = vmatpush1.bf16.msra.mxu1 %v2359_v62  ;;  %v2421_v62 = vld [vmem:[#allocation4 + $0x30c] ss:$16 sps:$4 sm:$0xff]  }
  0xb3   :  { %1474 = vmatprep.subr.bf16.mxu1 %v2367_v0  ;;  %v2419_v0 = vld [vmem:[#allocation4 + $0x308] ss:$16 sps:$4 sm:$0xff]  }
  0xb4   :  { %1393 = vmatpush1.bf16.msra.mxu0 %v2362_v1  ;;  %v2424_v1 = vld [vmem:[#allocation4 + $0x324] ss:$16 sps:$4 sm:$0xff]  }
  0xb5   :  { %1403 = vmatprep.subr.bf16.mxu0 %v2370_v3  ;;  %v2422_v3 = vld [vmem:[#allocation4 + $0x320] ss:$16 sps:$4 sm:$0xff]  }
  0xb6   :  { %1475 = vmatpush1.bf16.msra.mxu1 %v2365_v2  ;;  %v2427_v2 = vld [vmem:[#allocation4 + $0x32c] ss:$16 sps:$4 sm:$0xff]  }
  0xb7   :  { %1485 = vmatprep.subr.bf16.mxu1 %v2373_v4  ;;  %v2425_v4 = vld [vmem:[#allocation4 + $0x328] ss:$16 sps:$4 sm:$0xff]  }
 0x14a   :  { %v516_v12 = vpop.f32.mrb[0].mxu0 }
 0x14b   :  { %v517_v13 = vadd.f32 %v516_v12, %v138_v10  ;;  %v518_v14 = vpop.f32.mrb[1].mxu0  ;;  %v2433_v10 = vld [vmem:[#allocation4 + $0x34c] ss:$16 sps:$4 sm:$0xff]   ;;  %v2431_v12 = vld [vmem:[#allocation4 + $0x348] ss:$16 sps:$4 sm:$0xff]  }
 0x14c   :  { %v519_v15 = vadd.f32 %v518_v14, %v142_v11  ;;  %v520_v16 = vpop.f32.mrb[2].mxu0  ;;  %v2684_v40 = vpop.f32.mrb[0].mxu1  ;;  %v2428_v11 = vld [vmem:[#allocation4 + $0x340] ss:$16 sps:$4 sm:$0xff]   ;;  %v2439_v14 = vld [vmem:[#allocation4 + $0x36c] ss:$16 sps:$4 sm:$0xff]  }
 0x14d   :  { %v564_v17 = vmax.f32 %v517_v13, 0.0  ;;  %v521_v18 = vpop.f32.mrb[3].mxu0  ;;  %v559_v43 = vpop.f32.mrb[1].mxu1  ;;  %v2436_v13 = vld [vmem:[#allocation4 + $0x364] ss:$16 sps:$4 sm:$0xff]  }
 0x14e   :  { %v565_v19 = vmax.f32 %v519_v15, 0.0  ;;  %v560_v46 = vadd.f32 %v559_v43, %v150_v39  ;;  %v561_v47 = vpop.f32.mrb[2].mxu1  ;;  %v2434_v15 = vld [vmem:[#allocation4 + $0x360] ss:$16 sps:$4 sm:$0xff]   ;;  %v2437_v16 = vld [vmem:[#allocation4 + $0x368] ss:$16 sps:$4 sm:$0xff]  }
 0x14f   :  { %v568_v23 = vpack.c.bf16 %v564_v17, %v564_v17  ;;  %v562_v48 = vpop.f32.mrb[3].mxu1  ;;  %v2442_v17 = vld [vmem:[#allocation4 + $0x384] ss:$16 sps:$4 sm:$0xff]   ;;  %v2445_v18 = vld [vmem:[#allocation4 + $0x38c] ss:$16 sps:$4 sm:$0xff]  }
 0x150   :  { %v569_v20 = vpack.c.bf16 %v565_v19, %v565_v19  ;;  %v567_v49 = vmax.f32 %v560_v46, 0.0  ;;  %v2440_v19 = vld [vmem:[#allocation4 + $0x380] ss:$16 sps:$4 sm:$0xff]   ;;  %v2469_v43 = vld [vmem:[#allocation6 + $0xc8] sm:$0xff]  }
 0x151   :  { %v2466_v39 = vld [vmem:[#allocation6] sm:$0xff]   ;;  %v2472_v46 = vld [vmem:[#allocation6 + $0x50] sm:$0xff]  }
 0x152   :  { %1394 = vmatprep.mubr.bf16.mxu0 %v569_v20  ;;  %1476 = vmatprep.mubr.bf16.mxu1 %v569_v20  ;;  %v571_v54 = vpack.c.bf16 %v567_v49, %v567_v49  ;;  %v2443_v20 = vld [vmem:[#allocation4 + $0x388] ss:$16 sps:$4 sm:$0xff]   ;;  %v2473_v47 = vld [vmem:[#allocation6 + $0xd0] sm:$0xff]  }
 0x153   :  { %1395 = vmatmul.mubr.bf16.vlgmr.msra.gmra.mrb[4].mxu0 %v568_v23  ;;  %1477 = vmatmul.mubr.bf16.vlgmr.msra.gmra.mrb[4].mxu1 %v568_v23  ;;  %v2451_v23 = vld [vmem:[#allocation4 + $0x3ac] ss:$16 sps:$4 sm:$0xff]   ;;  %v2474_v48 = vld [vmem:[#allocation6 + $0x10] sm:$0xff]  }
 0x154   :  { %1404 = vmatpush1.bf16.msra.mxu0 %v2368_v21  ;;  %1486 = vmatpush1.bf16.msra.mxu1 %v2371_v22  ;;  %v145_v21 = vsub.s32 2, %v2665_v6  ;;  %v2448_v22 = vld [vmem:[#allocation4 + $0x3a4] ss:$16 sps:$4 sm:$0xff]  }
 0x155   :  { %1405 = vmatprep.subr.bf16.mxu0 %v2376_v24  ;;  %1487 = vmatprep.subr.bf16.mxu1 %v2379_v25  ;;  %v2446_v24 = vld [vmem:[#allocation4 + $0x3a0] ss:$16 sps:$4 sm:$0xff]   ;;  %v2449_v25 = vld [vmem:[#allocation4 + $0x3a8] ss:$16 sps:$4 sm:$0xff]  }
 0x156   :  { %1435 = vmatprep.mubr.bf16.mxu0 %v571_v54  ;;  %1517 = vmatprep.mubr.bf16.mxu1 %v571_v54  ;;  %v2475_v49 = vld [vmem:[#allocation6 + $0x90] sm:$0xff]   ;;  %v2480_v54 = vld [vmem:[#allocation6 + $0x60] sm:$0xff]  }
 0x158   :  { %1406 = vmatpush1.bf16.msra.mxu0 %v2374_v26  ;;  %1488 = vmatpush1.bf16.msra.mxu1 %v2377_v27  ;;  %v146_v26 = vrot.slane %v2671_v8, %v145_v21  ;;  %v2454_v27 = vld [vmem:[#allocation4 + $0x3c4] ss:$16 sps:$4 sm:$0xff]  }
 0x159   :  { %1407 = vmatprep.subr.bf16.mxu0 %v2382_v28  ;;  %1489 = vmatprep.subr.bf16.mxu1 %v2385_v29  ;;  %v2457_v28 = vld [vmem:[#allocation4 + $0x3cc] ss:$16 sps:$4 sm:$0xff]   ;;  %v2452_v29 = vld [vmem:[#allocation4 + $0x3c0] ss:$16 sps:$4 sm:$0xff]  }
 0x15a   :  { %v2464_v8 = vld [vmem:[#allocation6 + $0x40] sm:$0xff]  }
 0x15c   :  { %1408 = vmatpush1.bf16.msra.mxu0 %v2380_v30  ;;  %1490 = vmatpush1.bf16.msra.mxu1 %v2383_v31  ;;  %v2455_v30 = vld [vmem:[#allocation4 + $0x3c8] ss:$16 sps:$4 sm:$0xff]   ;;  %v558_v31 = vadd.f32 %v2684_v40, %v146_v26 }
 0x15d   :  { %1409 = vmatprep.subr.bf16.mxu0 %v2388_v32  ;;  %1491 = vmatprep.subr.bf16.mxu1 %v2391_v33  ;;  %v2460_v32 = vld [vmem:[#allocation4 + $0x3e4] ss:$16 sps:$4 sm:$0xff]   ;;  %v2463_v33 = vld [vmem:[#allocation4 + $0x3ec] ss:$16 sps:$4 sm:$0xff]  }
 0x15e   :  { %v2468_v40 = vld [vmem:[#allocation6 + $0x48] sm:$0xff]  }
 0x160   :  { %1410 = vmatpush1.bf16.msra.mxu0 %v2386_v35  ;;  %1492 = vmatpush1.bf16.msra.mxu1 %v2389_v36  ;;  %v2458_v35 = vld [vmem:[#allocation4 + $0x3e0] ss:$16 sps:$4 sm:$0xff]   ;;  %v2461_v36 = vld [vmem:[#allocation4 + $0x3e8] ss:$16 sps:$4 sm:$0xff]  }
 0x161   :  { %1411 = vmatprep.subr.bf16.mxu0 %v2394_v37  ;;  %1493 = vmatprep.subr.bf16.mxu1 %v2397_v38  ;;  %v566_v37 = vmax.f32 %v558_v31, 0.0  ;;  %v2465_v38 = vld [vmem:[#allocation6 + $0xc0] sm:$0xff]  }
 0x164   :  { %1412 = vmatpush1.bf16.msra.mxu0 %v2392_v41  ;;  %1494 = vmatpush1.bf16.msra.mxu1 %v2395_v42  ;;  %v2467_v41 = vld [vmem:[#allocation6 + $0x80] sm:$0xff]   ;;  %v570_v42 = vpack.c.bf16 %v566_v37, %v566_v37 }
 0x165   :  { %1413 = vmatprep.subr.bf16.mxu0 %v2400_v44  ;;  %1495 = vmatprep.subr.bf16.mxu1 %v2403_v45  ;;  %v2470_v44 = vld [vmem:[#allocation6 + $0x8] sm:$0xff]  }
 0x166   :  { %v2471_v45 = vld [vmem:[#allocation6 + $0x88] sm:$0xff]  }
 0x168   :  { %1414 = vmatpush1.bf16.msra.mxu0 %v2398_v50  ;;  %1496 = vmatpush1.bf16.msra.mxu1 %v2401_v51  ;;  %v2476_v50 = vld [vmem:[#allocation6 + $0x58] sm:$0xff]  }
 0x169   :  { %1415 = vmatprep.subr.bf16.mxu0 %v2406_v52  ;;  %1497 = vmatprep.subr.bf16.mxu1 %v2409_v53  ;;  %v2477_v51 = vld [vmem:[#allocation6 + $0xd8] sm:$0xff]  }
 0x16a   :  { %v2478_v52 = vld [vmem:[#allocation6 + $0x18] sm:$0xff]  }
 0x16b   :  { %v2479_v53 = vld [vmem:[#allocation6 + $0x98] sm:$0xff]  }
 0x16c   :  { %1416 = vmatpush1.bf16.msra.mxu0 %v2404_v55  ;;  %1498 = vmatpush1.bf16.msra.mxu1 %v2407_v56  ;;  %v2481_v55 = vld [vmem:[#allocation6 + $0xe0] sm:$0xff]  }
 0x16d   :  { %1417 = vmatprep.subr.bf16.mxu0 %v2412_v57  ;;  %1499 = vmatprep.subr.bf16.mxu1 %v2415_v58  ;;  %v2482_v56 = vld [vmem:[#allocation6 + $0x20] sm:$0xff]   ;;  %v2484_v58 = vld [vmem:[#allocation6 + $0x68] sm:$0xff]  }
 0x16e   :  { %v2483_v57 = vld [vmem:[#allocation6 + $0xa0] sm:$0xff]  }
 0x170   :  { %1418 = vmatpush1.bf16.msra.mxu0 %v2410_v59  ;;  %1500 = vmatpush1.bf16.msra.mxu1 %v2413_v60  ;;  %v2485_v59 = vld [vmem:[#allocation6 + $0xe8] sm:$0xff]  }
 0x171   :  { %1419 = vmatprep.subr.bf16.mxu0 %v2418_v61  ;;  %1501 = vmatprep.subr.bf16.mxu1 %v2421_v62  ;;  %v2486_v60 = vld [vmem:[#allocation6 + $0x28] sm:$0xff]   ;;  %v2488_v62 = vld [vmem:[#allocation6 + $0x70] sm:$0xff]  }
 0x172   :  { %v2487_v61 = vld [vmem:[#allocation6 + $0xa8] sm:$0xff]  }
 0x174   :  { %1420 = vmatpush1.bf16.msra.mxu0 %v2416_v63  ;;  %1502 = vmatpush1.bf16.msra.mxu1 %v2419_v0  ;;  %v2489_v63 = vld [vmem:[#allocation6 + $0xf0] sm:$0xff]  }
 0x175   :  { %1421 = vmatprep.subr.bf16.mxu0 %v2424_v1  ;;  %1503 = vmatprep.subr.bf16.mxu1 %v2427_v2  ;;  %v2490_v0 = vld [vmem:[#allocation6 + $0x30] sm:$0xff]   ;;  %v2492_v2 = vld [vmem:[#allocation6 + $0x78] sm:$0xff]  }
 0x176   :  { %v2491_v1 = vld [vmem:[#allocation6 + $0xb0] sm:$0xff]  }
 0x178   :  { %1422 = vmatpush1.bf16.msra.mxu0 %v2422_v3  ;;  %1504 = vmatpush1.bf16.msra.mxu1 %v2425_v4  ;;  %v2493_v3 = vld [vmem:[#allocation6 + $0xf8] sm:$0xff]  }
 0x179   :  { %1423 = vmatprep.subr.bf16.mxu0 %v2430_v5  ;;  %1505 = vmatprep.subr.bf16.mxu1 %v2433_v10  ;;  %v2494_v4 = vld [vmem:[#allocation6 + $0x38] sm:$0xff]   ;;  %v700_v10 = vld [vmem:[%s2712_s4] sm:$0xf] }
 0x17a   :  { %v2495_v5 = vld [vmem:[#allocation6 + $0xb8] sm:$0xff]  }
 0x17c   :  { %1424 = vmatpush1.bf16.msra.mxu0 %v2428_v11  ;;  %1506 = vmatpush1.bf16.msra.mxu1 %v2431_v12  ;;  %v705_v11 = vrot.slane %v700_v10, %v137_v7  ;;  %v713_v12 = vrot.slane %v700_v10, %v145_v21 }
 0x17d   :  { %1425 = vmatprep.subr.bf16.mxu0 %v2436_v13  ;;  %1507 = vmatprep.subr.bf16.mxu1 %v2439_v14  ;;  %v709_v13 = vrot.slane %v700_v10, %v141_v9  ;;  %v717_v14 = vrot.slane %v700_v10, %v149_v34 }
 0x180   :  { %1426 = vmatpush1.bf16.msra.mxu0 %v2434_v15  ;;  %1508 = vmatpush1.bf16.msra.mxu1 %v2437_v16 }
 0x181   :  { %1427 = vmatprep.subr.bf16.mxu0 %v2442_v17  ;;  %1509 = vmatprep.subr.bf16.mxu1 %v2445_v18 }
 0x184   :  { %1428 = vmatpush1.bf16.msra.mxu0 %v2440_v19  ;;  %1510 = vmatpush1.bf16.msra.mxu1 %v2443_v20 }
 0x185   :  { %1429 = vmatprep.subr.bf16.mxu0 %v2448_v22  ;;  %1511 = vmatprep.subr.bf16.mxu1 %v2451_v23 }
 0x188   :  { %1430 = vmatpush1.bf16.msra.mxu0 %v2446_v24  ;;  %1512 = vmatpush1.bf16.msra.mxu1 %v2449_v25 }
 0x189   :  { %1431 = vmatprep.subr.bf16.mxu0 %v2454_v27  ;;  %1513 = vmatprep.subr.bf16.mxu1 %v2457_v28 }
 0x18c   :  { %1432 = vmatpush1.bf16.msra.mxu0 %v2452_v29  ;;  %1514 = vmatpush1.bf16.msra.mxu1 %v2455_v30 }
 0x18d   :  { %1433 = vmatprep.subr.bf16.mxu0 %v2460_v32  ;;  %1515 = vmatprep.subr.bf16.mxu1 %v2463_v33  ;;  %v2078_v33 = vld [vmem:[%s2714_s6] ss:$0 sm:$0xff] }
 0x190   :  { %1434 = vmatpush1.bf16.msra.mxu0 %v2458_v35  ;;  %1516 = vmatpush1.bf16.msra.mxu1 %v2461_v36 }
 0x191   :  { %2111 = vmatprep.subr.bf16.mxu0 %v2464_v8  ;;  %2133 = vmatprep.subr.bf16.mxu1 %v2465_v38 }
 0x193   :  { %1436 = vmatmul.mubr.bf16.vlgmr.msra.gmra.mrb[4].mxu0 %v570_v42  ;;  %1518 = vmatmul.mubr.bf16.vlgmr.msra.gmra.mrb[4].mxu1 %v570_v42 }
 0x194   :  { %2112 = vmatpush3.bf16.msra.mxu0 %v2466_v39  ;;  %2134 = vmatpush3.bf16.msra.mxu1 %v2467_v41 }
 0x195   :  { %2113 = vmatprep.subr.bf16.mxu0 %v2468_v40  ;;  %2135 = vmatprep.subr.bf16.mxu1 %v2469_v43 }
 0x198   :  { %2114 = vmatpush3.bf16.msra.mxu0 %v2470_v44  ;;  %2136 = vmatpush3.bf16.msra.mxu1 %v2471_v45 }
 0x199   :  { %2115 = vmatprep.subr.bf16.mxu0 %v2472_v46  ;;  %2137 = vmatprep.subr.bf16.mxu1 %v2473_v47 }
 0x19c   :  { %2116 = vmatpush3.bf16.msra.mxu0 %v2474_v48  ;;  %2138 = vmatpush3.bf16.msra.mxu1 %v2475_v49 }
 0x19d   :  { %2117 = vmatprep.subr.bf16.mxu0 %v2476_v50  ;;  %2139 = vmatprep.subr.bf16.mxu1 %v2477_v51 }
 0x1a0   :  { %2118 = vmatpush3.bf16.msra.mxu0 %v2478_v52  ;;  %2140 = vmatpush3.bf16.msra.mxu1 %v2479_v53 }
 0x1a1   :  { %2119 = vmatprep.subr.bf16.mxu0 %v2480_v54  ;;  %2141 = vmatprep.subr.bf16.mxu1 %v2481_v55 }
 0x1a4   :  { %2120 = vmatpush3.bf16.msra.mxu0 %v2482_v56  ;;  %2142 = vmatpush3.bf16.msra.mxu1 %v2483_v57 }
 0x1a5   :  { %2121 = vmatprep.subr.bf16.mxu0 %v2484_v58  ;;  %2143 = vmatprep.subr.bf16.mxu1 %v2485_v59 }
 0x1a8   :  { %2122 = vmatpush3.bf16.msra.mxu0 %v2486_v60  ;;  %2144 = vmatpush3.bf16.msra.mxu1 %v2487_v61 }
 0x1a9   :  { %2123 = vmatprep.subr.bf16.mxu0 %v2488_v62  ;;  %2145 = vmatprep.subr.bf16.mxu1 %v2489_v63 }
 0x1ac   :  { %2124 = vmatpush3.bf16.msra.mxu0 %v2490_v0  ;;  %2146 = vmatpush3.bf16.msra.mxu1 %v2491_v1 }
 0x1ad   :  { %2125 = vmatprep.subr.bf16.mxu0 %v2492_v2  ;;  %2147 = vmatprep.subr.bf16.mxu1 %v2493_v3 }
 0x1b0   :  { %2126 = vmatpush3.bf16.msra.mxu0 %v2494_v4  ;;  %2148 = vmatpush3.bf16.msra.mxu1 %v2495_v5 }
 0x266   :  { %v1437_v15 = vpop.f32.mrb[4].mxu0  ;;  %v1519_v16 = vpop.f32.mrb[4].mxu1 }
 0x267   :  { %v2155_v17 = vadd.f32 %v1437_v15, %v705_v11  ;;  %v2157_v18 = vadd.f32 %v1519_v16, %v713_v12  ;;  %v1439_v19 = vpop.f32.mrb[5].mxu0  ;;  %v1521_v20 = vpop.f32.mrb[5].mxu1 }
 0x268   :  { %v2156_v22 = vadd.f32 %v1439_v19, %v709_v13  ;;  %v2158_v23 = vadd.f32 %v1521_v20, %v717_v14  ;;  %v1441_v24 = vpop.f32.mrb[6].mxu0  ;;  %v1523_v25 = vpop.f32.mrb[6].mxu1 }
 0x269   :  { %v1526_v7 = vmax.f32 %v2155_v17, 0.0  ;;  %v1528_v26 = vmax.f32 %v2157_v18, 0.0  ;;  %v1442_v27 = vpop.f32.mrb[7].mxu0  ;;  %v1524_v21 = vpop.f32.mrb[7].mxu1 }
 0x26a   :  { %v1527_v28 = vmax.f32 %v2156_v22, 0.0  ;;  %v1529_v29 = vmax.f32 %v2158_v23, 0.0 }
 0x26b   :  { %v1530_v6 = vpack.c.bf16 %v1526_v7, %v1526_v7  ;;  %v1532_v34 = vpack.c.bf16 %v1528_v26, %v1528_v26 }
 0x26c   :  { %v1531_v9 = vpack.c.bf16 %v1527_v28, %v1527_v28  ;;  %v1533_v30 = vpack.c.bf16 %v1529_v29, %v1529_v29 }
 0x26e   :  { %1829 = vmatprep.mubr.bf16.mxu0 %v1531_v9  ;;  %1869 = vmatprep.mubr.bf16.mxu1 %v1533_v30 }
 0x26f   :  { %1830 = vmatmul.mubr.bf16.vlgmr.msra.gmra.mrb[8].mxu0 %v1530_v6  ;;  %1870 = vmatmul.mubr.bf16.vlgmr.msra.gmra.mrb[8].mxu1 %v1532_v34 }
 0x342   :  { %v2127_v31 = vpop.f32.mrb[8].mxu0  ;;  %v2149_v32 = vpop.f32.mrb[8].mxu1 }
 0x343   :  { %v2128_v35 = vpop.f32.mrb[9].mxu0  ;;  %v2150_v36 = vpop.f32.mrb[9].mxu1 }
 0x344   :  { %v2129_v37 = vadd.f32 %v2128_v35, %v2127_v31  ;;  %v2151_v8 = vadd.f32 %v2150_v36, %v2149_v32  ;;  %v2130_v38 = vpop.f32.mrb[10].mxu0  ;;  %v2152_v39 = vpop.f32.mrb[10].mxu1 }
 0x345   :  { %v2131_v41 = vpop.f32.mrb[11].mxu0  ;;  %v2153_v42 = vpop.f32.mrb[11].mxu1 }
 0x346   :  { %v1832_v40 = vadd.f32 %v2129_v37, %v2078_v33 }
 0x348   :  { %v1872_v43 = vadd.f32 %v2151_v8, %v1832_v40 }
 0x34a   :  { %1877 = vst [vmem:[%s2715_s7] sm:$0xff] %v1872_v43 }
 0x34b   :  { %1882 = vsyncpa [#allocation3], 1 }
 0x34c   :  { %1883 = vsyncpa [#allocation5], 1 }

</bundles_post_ra>
